<compile_context>
chip_gen: v5e
topology: v5e:2x2
jax: 0.10.0
libtpu: 0.0.40
codegen_flags: <defaults>
</compile_context>

<pallas_src>
import functools
from math import sqrt

import jax
import jax.numpy as jnp
from jax import lax
from jax.experimental import pallas as pl
from jax.experimental.pallas import tpu as pltpu


# ---------------------------------------------------------------------------
# small helpers
# ---------------------------------------------------------------------------
def _const_index(ndim):
    return lambda *_: (0,) * ndim


def _layer_norm_f32(x_f32, gamma, beta, eps=1e-5):
    mu = jnp.mean(x_f32, axis=-1, keepdims=True)
    c = x_f32 - mu
    var = jnp.mean(c * c, axis=-1, keepdims=True)
    return c * lax.rsqrt(var + eps) * gamma + beta


def _pick_tile(n, requested, multiple):
    """Largest divisor of n that is <= requested and a multiple of `multiple`."""
    requested = max(multiple, min(requested, n))
    best = None
    for d in range(multiple, n + 1, multiple):
        if d <= requested and n % d == 0:
            best = d
    if best is not None:
        return best
    # TODO(synk): pad N (with key masking) instead of falling back to full rows.
    return n


@functools.lru_cache(maxsize=None)
def _supports_buffered():
    """Explicit capability probe for pl.Buffered(1) (single-buffered operands)."""
    if not hasattr(pl, "Buffered"):
        return False
    try:
        def _probe(x_ref, o_ref):
            o_ref[...] = x_ref[...] + 1.0

        fn = pl.pallas_call(
            _probe,
            out_shape=jax.ShapeDtypeStruct((8, 128), jnp.float32),
            grid=(1,),
            in_specs=[pl.BlockSpec((8, 128), lambda i: (0, 0),
                                   pipeline_mode=pl.Buffered(1))],
            out_specs=pl.BlockSpec((8, 128), lambda i: (0, 0)),
        )
        jax.block_until_ready(fn(jnp.zeros((8, 128), jnp.float32)))
        return True
    except Exception:
        return False


@functools.lru_cache(maxsize=None)
def _vmem_limit_bytes():
    """Per-generation VMEM budget derived from the hardware (85% of capacity)."""
    cap = 64 * 1024 * 1024
    try:
        cap = int(pltpu.get_tpu_info().vmem_capacity_bytes)
    except Exception:
        pass
    return int(min(cap * 0.85, 120 * 1024 * 1024))


# ---------------------------------------------------------------------------
# Phase 1: LayerNorm1 + fused Q/K/V projection (token-major, lane-dense out)
# ---------------------------------------------------------------------------
def _qkv_projection_kernel(x_ref, g1_ref, be1_ref, wq_ref, wk_ref, wv_ref,
                           q_ref, k_ref, v_ref, *, mxu_dtype):
    f32 = jnp.float32
    xn = _layer_norm_f32(x_ref[0].astype(f32), g1_ref[...], be1_ref[...])
    xn = xn.astype(mxu_dtype)                                     # (TP, D)
    # Single wide MXU matmuls (output width H*Dk / H*Dv), f32 accumulation.
    q_ref[0] = jnp.dot(xn, wq_ref[...],
                       preferred_element_type=f32).astype(q_ref.dtype)
    k_ref[0] = jnp.dot(xn, wk_ref[...],
                       preferred_element_type=f32).astype(k_ref.dtype)
    v_ref[0] = jnp.dot(xn, wv_ref[...],
                       preferred_element_type=f32).astype(v_ref.dtype)


# ---------------------------------------------------------------------------
# Phase 2: flash attention (online softmax over KV) + out-proj + LN2 + MLP
# ---------------------------------------------------------------------------
def _attn_mlp_kernel(x_ref, q_ref, k_ref, v_ref,
                     wa_ref, ba_ref, g2_ref, be2_ref,
                     w1_ref, b1_ref, w2_ref, b2_ref,
                     o_ref,
                     m_scratch, l_scratch, acc_scratch,
                     *, num_heads, mxu_dtype, approx_recip):
    f32 = jnp.float32
    kv = pl.program_id(2)

    @pl.when(kv == 0)
    def _():
        m_scratch[...] = jnp.full_like(m_scratch, -jnp.inf)
        l_scratch[...] = jnp.zeros_like(l_scratch)
        acc_scratch[...] = jnp.zeros_like(acc_scratch)

    q = q_ref[...]                                   # (H, TQ, Dk), scale folded in
    k = k_ref[...]                                   # (H, TKV, Dk)
    v = v_ref[...]                                   # (H, TKV, Dv)

    s = jnp.einsum("hqd,hkd->hqk", q, k,
                   preferred_element_type=f32)       # (H, TQ, TKV)
    m_prev = m_scratch[...]
    m_new = jnp.maximum(m_prev, jnp.max(s, axis=-1, keepdims=True))
    alpha = jnp.exp(m_prev - m_new)
    p = jnp.exp(s - m_new)
    l_scratch[...] = alpha * l_scratch[...] + jnp.sum(p, axis=-1, keepdims=True)
    acc_scratch[...] = alpha * acc_scratch[...] + jnp.einsum(
        "hqk,hkv->hqv", p.astype(mxu_dtype), v, preferred_element_type=f32)
    m_scratch[...] = m_new

    @pl.when(kv == pl.num_programs(2) - 1)
    def _():
        # Softmax normalization (EUP reciprocal; configurable for exact numerics).
        if approx_recip:
            inv_l = pl.reciprocal(l_scratch[...], approx=True)    # (H, TQ, 1)
        else:
            inv_l = 1.0 / l_scratch[...]
        att = acc_scratch[...] * inv_l                            # (H, TQ, Dv)

        # Merge heads along the lane axis ('B H N D -> B N (H D)') and fuse the
        # head reduction into ONE output-projection matmul with depth H*Dv.
        att_cat = jnp.concatenate([att[h] for h in range(num_heads)],
                                  axis=-1)                        # (TQ, H*Dv)
        proj = jnp.dot(att_cat.astype(mxu_dtype), wa_ref[...],
                       preferred_element_type=jnp.float32) + ba_ref[...]
        x1 = x_ref[0].astype(jnp.float32) + proj                  # residual 1

        # LN2 -> MLP (exact GELU, f32) -> residual 2
        xn2 = _layer_norm_f32(x1, g2_ref[...], be2_ref[...]).astype(mxu_dtype)
        h = jnp.dot(xn2, w1_ref[...],
                    preferred_element_type=jnp.float32) + b1_ref[...]
        h = 0.5 * h * (1.0 + lax.erf(h * (1.0 / sqrt(2.0))))
        mlp = jnp.dot(h.astype(mxu_dtype), w2_ref[...],
                      preferred_element_type=jnp.float32) + b2_ref[...]
        o_ref[0] = (x1 + mlp).astype(o_ref.dtype)


# ---------------------------------------------------------------------------
# Wrapper
# ---------------------------------------------------------------------------
def transformer_layer(x, params, *, num_heads, key_dim, val_dim,
                      tq=256, tkv=512, tp=512,
                      mxu_dtype=jnp.bfloat16, approx_reciprocal=True):
    B, N, D = x.shape
    (wq, wk, wv, wa, ba, g1, be1, g2, be2, w1, b1, w2, b2) = params
    hdk = num_heads * key_dim
    hdv = num_heads * val_dim

    f32 = jnp.float32
    cast = lambda w: w.astype(mxu_dtype)

    # Fold the 1/sqrt(key_dim) attention scale into WQ on the host.
    wq_s = cast(wq * (1.0 / sqrt(key_dim)))
    wk_c, wv_c, wa_c = cast(wk), cast(wv), cast(wa)
    w1_c, w2_c = cast(w1), cast(w2)
    ba_f, b1_f, b2_f = ba.astype(f32), b1.astype(f32), b2.astype(f32)
    g1_f, be1_f = g1.astype(f32), be1.astype(f32)
    g2_f, be2_f = g2.astype(f32), be2.astype(f32)

    # Sublane-aware tile sizes (16 rows for sub-32-bit operands, else 8).
    sub = 16 if (jnp.dtype(mxu_dtype).itemsize < 4 or x.dtype.itemsize < 4) else 8
    tq = _pick_tile(N, tq, sub)
    tkv = _pick_tile(N, tkv, sub)
    tp = _pick_tile(N, tp, sub)

    vmem_limit = _vmem_limit_bytes()
    use_buffered = _supports_buffered()

    def wspec(w):
        # Constant-index weight operands: single-buffer them when supported.
        if use_buffered:
            return pl.BlockSpec(w.shape, _const_index(w.ndim),
                                pipeline_mode=pl.Buffered(1))
        return pl.BlockSpec(w.shape, _const_index(w.ndim))

    # ---- Phase 1: LN1 + Q/K/V projection ---------------------------------
    proj = pl.pallas_call(
        functools.partial(_qkv_projection_kernel, mxu_dtype=mxu_dtype),
        out_shape=(jax.ShapeDtypeStruct((B, N, hdk), mxu_dtype),
                   jax.ShapeDtypeStruct((B, N, hdk), mxu_dtype),
                   jax.ShapeDtypeStruct((B, N, hdv), mxu_dtype)),
        grid_spec=pltpu.PrefetchScalarGridSpec(
            num_scalar_prefetch=0,
            grid=(B, N // tp),
            in_specs=[pl.BlockSpec((1, tp, D), lambda b, t: (b, t, 0)),
                      wspec(g1_f), wspec(be1_f),
                      wspec(wq_s), wspec(wk_c), wspec(wv_c)],
            out_specs=(pl.BlockSpec((1, tp, hdk), lambda b, t: (b, t, 0)),
                       pl.BlockSpec((1, tp, hdk), lambda b, t: (b, t, 0)),
                       pl.BlockSpec((1, tp, hdv), lambda b, t: (b, t, 0)))),
        compiler_params=pltpu.CompilerParams(
            dimension_semantics=("parallel", "parallel"),
            vmem_limit_bytes=vmem_limit),
    )
    q_tok, k_tok, v_tok = proj(x, g1_f, be1_f, wq_s, wk_c, wv_c)

    # Layout plumbing (XLA): token-major -> head-major (B*H, N, Dk/Dv).
    def to_heads(t, dh):
        return (t.reshape(B, N, num_heads, dh)
                 .transpose(0, 2, 1, 3)
                 .reshape(B * num_heads, N, dh))
    q_hm = to_heads(q_tok, key_dim)
    k_hm = to_heads(k_tok, key_dim)
    v_hm = to_heads(v_tok, val_dim)

    # ---- Phase 2: attention + output projection + LN2 + MLP ---------------
    attn = pl.pallas_call(
        functools.partial(_attn_mlp_kernel, num_heads=num_heads,
                          mxu_dtype=mxu_dtype, approx_recip=approx_reciprocal),
        out_shape=jax.ShapeDtypeStruct((B, N, D), x.dtype),
        grid_spec=pltpu.PrefetchScalarGridSpec(
            num_scalar_prefetch=0,
            grid=(B, N // tq, N // tkv),
            in_specs=[
                pl.BlockSpec((1, tq, D), lambda b, qi, kv: (b, qi, 0)),
                pl.BlockSpec((num_heads, tq, key_dim),
                             lambda b, qi, kv: (b, qi, 0)),
                pl.BlockSpec((num_heads, tkv, key_dim),
                             lambda b, qi, kv: (b, kv, 0)),
                pl.BlockSpec((num_heads, tkv, val_dim),
                             lambda b, qi, kv: (b, kv, 0)),
                wspec(wa_c), wspec(ba_f), wspec(g2_f), wspec(be2_f),
                wspec(w1_c), wspec(b1_f), wspec(w2_c), wspec(b2_f)],
            out_specs=pl.BlockSpec((1, tq, D), lambda b, qi, kv: (b, qi, 0)),
            scratch_shapes=[
                pltpu.VMEM((num_heads, tq, 1), jnp.float32),   # running max
                pltpu.VMEM((num_heads, tq, 1), jnp.float32),   # running sum
                pltpu.VMEM((num_heads, tq, val_dim), jnp.float32)]),  # acc
        compiler_params=pltpu.CompilerParams(
            dimension_semantics=("parallel", "parallel", "arbitrary"),
            vmem_limit_bytes=vmem_limit),
    )
    return attn(x, q_hm, k_hm, v_hm, wa_c, ba_f, g2_f, be2_f,
                w1_c, b1_f, w2_c, b2_f)


# ---------------------------------------------------------------------------
# Pure-JAX reference (same math / torch layout semantics)
# ---------------------------------------------------------------------------
def reference(x, params, *, num_heads, key_dim, val_dim):
    (wq, wk, wv, wa, ba, g1, be1, g2, be2, w1, b1, w2, b2) = params
    eps = 1e-5

    def ln(v, g, b):
        mu = jnp.mean(v, -1, keepdims=True)
        var = jnp.mean((v - mu) ** 2, -1, keepdims=True)
        return (v - mu) / jnp.sqrt(var + eps) * g + b

    B, N, D = x.shape
    xn = ln(x, g1, be1)
    q = (xn @ wq).reshape(B, N, num_heads, key_dim).transpose(0, 2, 1, 3)
    k = (xn @ wk).reshape(B, N, num_heads, key_dim).transpose(0, 2, 1, 3)
    v = (xn @ wv).reshape(B, N, num_heads, val_dim).transpose(0, 2, 1, 3)
    p = jnp.einsum("bhmd,bhnd->bhmn", q, k) / sqrt(key_dim)
    s = jax.nn.softmax(p, axis=-1)
    a = jnp.einsum("bhnm,bhmd->bhnd", s, v)
    a = a.transpose(0, 2, 1, 3).reshape(B, N, num_heads * val_dim)
    x1 = x + (a @ wa + ba)
    xn2 = ln(x1, g2, be2)
    h = xn2 @ w1 + b1
    h = 0.5 * h * (1.0 + lax.erf(h / sqrt(2.0)))
    return x1 + (h @ w2 + b2)


# ---------------------------------------------------------------------------
if __name__ == "__main__":
    B, N = 2, 32
    input_dim, key_dim, val_dim, mlp_dim = 32, 16, 16, 64
    num_heads = 2

    key = jax.random.PRNGKey(0)
    ks = jax.random.split(key, 16)
    scale = 0.05

    x = jax.random.normal(ks[0], (B, N, input_dim), jnp.float32)

    wq = scale * jax.random.normal(ks[1], (input_dim, num_heads * key_dim), jnp.float32)
    wk = scale * jax.random.normal(ks[2], (input_dim, num_heads * key_dim), jnp.float32)
    wv = scale * jax.random.normal(ks[3], (input_dim, num_heads * val_dim), jnp.float32)
    wa = scale * jax.random.normal(ks[4], (num_heads * val_dim, input_dim), jnp.float32)
    ba = scale * jax.random.normal(ks[5], (1, input_dim), jnp.float32)
    g1 = jnp.ones((1, input_dim), jnp.float32)
    be1 = jnp.zeros((1, input_dim), jnp.float32)
    g2 = jnp.ones((1, input_dim), jnp.float32)
    be2 = jnp.zeros((1, input_dim), jnp.float32)
    w1 = scale * jax.random.normal(ks[6], (input_dim, mlp_dim), jnp.float32)
    b1 = scale * jax.random.normal(ks[7], (1, mlp_dim), jnp.float32)
    w2 = scale * jax.random.normal(ks[8], (mlp_dim, input_dim), jnp.float32)
    b2 = scale * jax.random.normal(ks[9], (1, input_dim), jnp.float32)

    params = (wq, wk, wv, wa, ba, g1, be1, g2, be2, w1, b1, w2, b2)

    ref = reference(x, params, num_heads=num_heads,
                    key_dim=key_dim, val_dim=val_dim)

    # f32 MXU path, exact reciprocal: tight check.  tq=tkv=8 -> 4x4 q/kv tiles,
    # exercising the online-softmax recurrence and the parallel grid axes.
    out_f32 = transformer_layer(x, params, num_heads=num_heads, key_dim=key_dim,
                                val_dim=val_dim, tq=8, tkv=8, tp=8,
                                mxu_dtype=jnp.float32, approx_reciprocal=False)
    out_f32 = jax.block_until_ready(out_f32)
    assert out_f32.shape == (B, N, input_dim)
    assert jnp.allclose(out_f32, ref, atol=2e-3, rtol=2e-3), "f32 mismatch vs reference"

    # Default mixed-precision path: bf16 MXU operands, f32 statistics/accumulation,
    # approximate softmax reciprocal.  tq=tkv=16 keeps bf16 sublane packing.
    out_bf16 = transformer_layer(x, params, num_heads=num_heads, key_dim=key_dim,
                                 val_dim=val_dim, tq=16, tkv=16, tp=16)
    out_bf16 = jax.block_until_ready(out_bf16)
    assert out_bf16.shape == (B, N, input_dim)
    assert jnp.allclose(out_bf16, ref, atol=6e-2, rtol=6e-2), "bf16 mismatch vs reference"

    print("KERNEL_OK")
</pallas_src>

<mosaic_0001>
module attributes {stable_mosaic.version = 11 : i64} {
  func.func @_probe(%arg0: i32, %arg1: memref<8x128xf32, #tpu.memory_space<vmem>>, %arg2: memref<8x128xf32, #tpu.memory_space<vmem>>) attributes {dimension_semantics = [#tpu.dimension_semantics<arbitrary>], iteration_bounds = array<i64: 1>, scalar_prefetch = 0 : i64, scratch_operands = 0 : i64, tpu.core_type = #tpu.core_type<tc>, window_params = [{pipeline_mode = #tpu.pipeline_mode<synchronous>, transform_indices = @transform_0, window_bounds = array<i64: 8, 128>}, {pipeline_mode = #tpu.pipeline_mode<synchronous>, transform_indices = @transform_1, window_bounds = array<i64: 8, 128>}]} {
    %c0 = arith.constant 0 : index
    %c0_0 = arith.constant 0 : index
    %0 = vector.load %arg1[%c0, %c0_0] : memref<8x128xf32, #tpu.memory_space<vmem>>, vector<8x128xf32>
    %cst = arith.constant 1.000000e+00 : f32
    %1 = vector.broadcast %cst : f32 to vector<8x128xf32>
    %2 = arith.addf %0, %1 : vector<8x128xf32>
    %c0_1 = arith.constant 0 : index
    %c0_2 = arith.constant 0 : index
    %3 = vector.load %arg2[%c0_1, %c0_2] : memref<8x128xf32, #tpu.memory_space<vmem>>, vector<8x128xf32>
    tpu.vector_store %arg2[%c0_1, %c0_2], %2 {strides = array<i32>} : memref<8x128xf32, #tpu.memory_space<vmem>>, vector<8x128xf32>,
    return
  }
  func.func @transform_0(%arg0: i32) -> (i32, i32) {
    %c0_i32 = arith.constant 0 : i32
    %c0_i32_0 = arith.constant 0 : i32
    %c0_i32_1 = arith.constant 0 : i32
    return %c0_i32, %c0_i32_0 : i32, i32
  }
  func.func @transform_1(%arg0: i32) -> (i32, i32) {
    %c0_i32 = arith.constant 0 : i32
    %c0_i32_0 = arith.constant 0 : i32
    %c0_i32_1 = arith.constant 0 : i32
    return %c0_i32, %c0_i32_0 : i32, i32
  }
}

module attributes {stable_mosaic.version = 11 : i64} {
  func.func @_qkv_projection_kernel(%arg0: i32, %arg1: i32, %arg2: memref<1x8x32xf32, #tpu.memory_space<vmem>>, %arg3: memref<1x32xf32, #tpu.memory_space<vmem>>, %arg4: memref<1x32xf32, #tpu.memory_space<vmem>>, %arg5: memref<32x32xf32, #tpu.memory_space<vmem>>, %arg6: memref<32x32xf32, #tpu.memory_space<vmem>>, %arg7: memref<32x32xf32, #tpu.memory_space<vmem>>, %arg8: memref<1x8x32xf32, #tpu.memory_space<vmem>>, %arg9: memref<1x8x32xf32, #tpu.memory_space<vmem>>, %arg10: memref<1x8x32xf32, #tpu.memory_space<vmem>>) attributes {dimension_semantics = [#tpu.dimension_semantics<parallel>, #tpu.dimension_semantics<parallel>], iteration_bounds = array<i64: 2, 4>, scalar_prefetch = 0 : i64, scratch_operands = 0 : i64, tpu.core_type = #tpu.core_type<tc>, window_params = [{transform_indices = @transform_0, window_bounds = array<i64: 1, 8, 32>}, {pipeline_mode = #tpu.pipeline_mode<synchronous>, transform_indices = @transform_1, window_bounds = array<i64: 1, 32>}, {pipeline_mode = #tpu.pipeline_mode<synchronous>, transform_indices = @transform_2, window_bounds = array<i64: 1, 32>}, {pipeline_mode = #tpu.pipeline_mode<synchronous>, transform_indices = @transform_3, window_bounds = array<i64: 32, 32>}, {pipeline_mode = #tpu.pipeline_mode<synchronous>, transform_indices = @transform_4, window_bounds = array<i64: 32, 32>}, {pipeline_mode = #tpu.pipeline_mode<synchronous>, transform_indices = @transform_5, window_bounds = array<i64: 32, 32>}, {transform_indices = @transform_6, window_bounds = array<i64: 1, 8, 32>}, {transform_indices = @transform_7, window_bounds = array<i64: 1, 8, 32>}, {transform_indices = @transform_8, window_bounds = array<i64: 1, 8, 32>}]} {
    %c0 = arith.constant 0 : index
    %c0_0 = arith.constant 0 : index
    %c0_1 = arith.constant 0 : index
    %0 = vector.load %arg2[%c0, %c0_0, %c0_1] : memref<1x8x32xf32, #tpu.memory_space<vmem>>, vector<1x8x32xf32>
    %1 = vector.shape_cast %0 : vector<1x8x32xf32> to vector<8x32xf32>
    %c0_2 = arith.constant 0 : index
    %c0_3 = arith.constant 0 : index
    %2 = vector.load %arg3[%c0_2, %c0_3] : memref<1x32xf32, #tpu.memory_space<vmem>>, vector<1x32xf32>
    %c0_4 = arith.constant 0 : index
    %c0_5 = arith.constant 0 : index
    %3 = vector.load %arg4[%c0_4, %c0_5] : memref<1x32xf32, #tpu.memory_space<vmem>>, vector<1x32xf32>
    %cst = arith.constant dense<0.000000e+00> : vector<8xf32>
    %4 = vector.multi_reduction <add>, %1, %cst [1] : vector<8x32xf32> to vector<8xf32>
    %5 = vector.shape_cast %4 : vector<8xf32> to vector<8x1xf32>
    %cst_6 = arith.constant 3.200000e+01 : f32
    %6 = vector.broadcast %cst_6 : f32 to vector<8x1xf32>
    %7 = arith.divf %5, %6 : vector<8x1xf32>
    %8 = vector.broadcast %7 : vector<8x1xf32> to vector<8x32xf32>
    %9 = arith.subf %1, %8 : vector<8x32xf32>
    %10 = arith.mulf %9, %9 : vector<8x32xf32>
    %cst_7 = arith.constant dense<0.000000e+00> : vector<8xf32>
    %11 = vector.multi_reduction <add>, %10, %cst_7 [1] : vector<8x32xf32> to vector<8xf32>
    %12 = vector.shape_cast %11 : vector<8xf32> to vector<8x1xf32>
    %cst_8 = arith.constant 3.200000e+01 : f32
    %13 = vector.broadcast %cst_8 : f32 to vector<8x1xf32>
    %14 = arith.divf %12, %13 : vector<8x1xf32>
    %cst_9 = arith.constant 9.99999974E-6 : f32
    %15 = vector.broadcast %cst_9 : f32 to vector<8x1xf32>
    %16 = arith.addf %14, %15 : vector<8x1xf32>
    %17 = math.rsqrt %16 : vector<8x1xf32>
    %18 = vector.broadcast %17 : vector<8x1xf32> to vector<8x32xf32>
    %19 = arith.mulf %9, %18 : vector<8x32xf32>
    %20 = vector.broadcast %2 : vector<1x32xf32> to vector<8x32xf32>
    %21 = arith.mulf %19, %20 : vector<8x32xf32>
    %22 = vector.broadcast %3 : vector<1x32xf32> to vector<8x32xf32>
    %23 = arith.addf %21, %22 : vector<8x32xf32>
    %c0_10 = arith.constant 0 : index
    %c0_11 = arith.constant 0 : index
    %24 = vector.load %arg5[%c0_10, %c0_11] : memref<32x32xf32, #tpu.memory_space<vmem>>, vector<32x32xf32>
    %cst_12 = arith.constant dense<0.000000e+00> : vector<8x32xf32>
    %25 = tpu.matmul %23, %24, %cst_12 {dimension_numbers = #tpu.dot_dimension_numbers<[1], [0], [0], [1], [0, 0, 1, 1], [], []>} : vector<8x32xf32>, vector<32x32xf32>, vector<8x32xf32> -> vector<8x32xf32>
    %c0_13 = arith.constant 0 : index
    %c0_14 = arith.constant 0 : index
    %c0_15 = arith.constant 0 : index
    %26 = vector.load %arg8[%c0_13, %c0_14, %c0_15] : memref<1x8x32xf32, #tpu.memory_space<vmem>>, vector<1x8x32xf32>
    %27 = vector.shape_cast %26 : vector<1x8x32xf32> to vector<8x32xf32>
    %28 = vector.shape_cast %25 : vector<8x32xf32> to vector<1x8x32xf32>
    tpu.vector_store %arg8[%c0_13, %c0_14, %c0_15], %28 {strides = array<i32>} : memref<1x8x32xf32, #tpu.memory_space<vmem>>, vector<1x8x32xf32>,
    %c0_16 = arith.constant 0 : index
    %c0_17 = arith.constant 0 : index
    %29 = vector.load %arg6[%c0_16, %c0_17] : memref<32x32xf32, #tpu.memory_space<vmem>>, vector<32x32xf32>
    %cst_18 = arith.constant dense<0.000000e+00> : vector<8x32xf32>
    %30 = tpu.matmul %23, %29, %cst_18 {dimension_numbers = #tpu.dot_dimension_numbers<[1], [0], [0], [1], [0, 0, 1, 1], [], []>} : vector<8x32xf32>, vector<32x32xf32>, vector<8x32xf32> -> vector<8x32xf32>
    %c0_19 = arith.constant 0 : index
    %c0_20 = arith.constant 0 : index
    %c0_21 = arith.constant 0 : index
    %31 = vector.load %arg9[%c0_19, %c0_20, %c0_21] : memref<1x8x32xf32, #tpu.memory_space<vmem>>, vector<1x8x32xf32>
    %32 = vector.shape_cast %31 : vector<1x8x32xf32> to vector<8x32xf32>
    %33 = vector.shape_cast %30 : vector<8x32xf32> to vector<1x8x32xf32>
    tpu.vector_store %arg9[%c0_19, %c0_20, %c0_21], %33 {strides = array<i32>} : memref<1x8x32xf32, #tpu.memory_space<vmem>>, vector<1x8x32xf32>,
    %c0_22 = arith.constant 0 : index
    %c0_23 = arith.constant 0 : index
    %34 = vector.load %arg7[%c0_22, %c0_23] : memref<32x32xf32, #tpu.memory_space<vmem>>, vector<32x32xf32>
    %cst_24 = arith.constant dense<0.000000e+00> : vector<8x32xf32>
    %35 = tpu.matmul %23, %34, %cst_24 {dimension_numbers = #tpu.dot_dimension_numbers<[1], [0], [0], [1], [0, 0, 1, 1], [], []>} : vector<8x32xf32>, vector<32x32xf32>, vector<8x32xf32> -> vector<8x32xf32>
    %c0_25 = arith.constant 0 : index
    %c0_26 = arith.constant 0 : index
    %c0_27 = arith.constant 0 : index
    %36 = vector.load %arg10[%c0_25, %c0_26, %c0_27] : memref<1x8x32xf32, #tpu.memory_space<vmem>>, vector<1x8x32xf32>
    %37 = vector.shape_cast %36 : vector<1x8x32xf32> to vector<8x32xf32>
    %38 = vector.shape_cast %35 : vector<8x32xf32> to vector<1x8x32xf32>
    tpu.vector_store %arg10[%c0_25, %c0_26, %c0_27], %38 {strides = array<i32>} : memref<1x8x32xf32, #tpu.memory_space<vmem>>, vector<1x8x32xf32>,
    return
  }
  func.func @transform_0(%arg0: i32, %arg1: i32) -> (i32, i32, i32) {
    %c0_i32 = arith.constant 0 : i32
    %c0_i32_0 = arith.constant 0 : i32
    return %arg0, %arg1, %c0_i32 : i32, i32, i32
  }
  func.func @transform_1(%arg0: i32, %arg1: i32) -> (i32, i32) {
    %c0_i32 = arith.constant 0 : i32
    %c0_i32_0 = arith.constant 0 : i32
    %c0_i32_1 = arith.constant 0 : i32
    return %c0_i32, %c0_i32_0 : i32, i32
  }
  func.func @transform_2(%arg0: i32, %arg1: i32) -> (i32, i32) {
    %c0_i32 = arith.constant 0 : i32
    %c0_i32_0 = arith.constant 0 : i32
    %c0_i32_1 = arith.constant 0 : i32
    return %c0_i32, %c0_i32_0 : i32, i32
  }
  func.func @transform_3(%arg0: i32, %arg1: i32) -> (i32, i32) {
    %c0_i32 = arith.constant 0 : i32
    %c0_i32_0 = arith.constant 0 : i32
    %c0_i32_1 = arith.constant 0 : i32
    return %c0_i32, %c0_i32_0 : i32, i32
  }
  func.func @transform_4(%arg0: i32, %arg1: i32) -> (i32, i32) {
    %c0_i32 = arith.constant 0 : i32
    %c0_i32_0 = arith.constant 0 : i32
    %c0_i32_1 = arith.constant 0 : i32
    return %c0_i32, %c0_i32_0 : i32, i32
  }
  func.func @transform_5(%arg0: i32, %arg1: i32) -> (i32, i32) {
    %c0_i32 = arith.constant 0 : i32
    %c0_i32_0 = arith.constant 0 : i32
    %c0_i32_1 = arith.constant 0 : i32
    return %c0_i32, %c0_i32_0 : i32, i32
  }
  func.func @transform_6(%arg0: i32, %arg1: i32) -> (i32, i32, i32) {
    %c0_i32 = arith.constant 0 : i32
    %c0_i32_0 = arith.constant 0 : i32
    return %arg0, %arg1, %c0_i32 : i32, i32, i32
  }
  func.func @transform_7(%arg0: i32, %arg1: i32) -> (i32, i32, i32) {
    %c0_i32 = arith.constant 0 : i32
    %c0_i32_0 = arith.constant 0 : i32
    return %arg0, %arg1, %c0_i32 : i32, i32, i32
  }
  func.func @transform_8(%arg0: i32, %arg1: i32) -> (i32, i32, i32) {
    %c0_i32 = arith.constant 0 : i32
    %c0_i32_0 = arith.constant 0 : i32
    return %arg0, %arg1, %c0_i32 : i32, i32, i32
  }
}

</mosaic_0001>

<bundles_post_ra>
// kernel: tpu_custom_call.1
= control target key start
LH: loop header
LB: loop body
LE: loop exit
PB: predicated region body
PF: predicated region fallthrough
CT: control target
= control target key end

     0   :  { %6 = vsyncpa [#allocation3], 0  ;;  %s115_s0 = inlined_call_operand.hbm [shape: f32[8,128], index: 0, kind: input, shape index: {}]   ;;  %s116_s1 = inlined_call_operand.hbm [shape: f32[8,128], index: 1, kind: output, shape index: {}]  }
   0x1   :  { %7 = vsyncpa [#allocation4], 0  ;;  %s13_s8 = sshll.u32 %s115_s0, 4  ;;  %s97_s9 = smov [#allocation2]   ;;  %s14_s8 = int_to_ptr.hbm [resolvable:$true] %s13_s8 }
   0x2   :  { %s15_s10 = sshll.u32 %s97_s9, 4  ;;  %s16_s10 = int_to_ptr.vmem [resolvable:$true] %s15_s10 }
   0x3   :  { %18 = dma.hbm_to_vmem [thread:$0]  %s14_s8, 128, %s16_s10, [#allocation3]  }
   0x4   :  { %93 = dma.done.wait [#allocation3], 128  }
   0x5   :  { %94 = vsyncadd [#allocation3], 4294967168  ;;  %s98_s11 = smov [#allocation5]   ;;  %s33_s15 = sshll.u32 %s116_s1, 4  ;;  %v23_v0 = vld [vmem:[#allocation2] sm:$0xff]  ;;  %s34_s15 = int_to_ptr.hbm [resolvable:$true] %s33_s15 }
   0x6   :  { %s31_s12 = sshll.u32 %s98_s11, 4  ;;  %v24_v1 = vadd.f32 1.0, %v23_v0  ;;  %s32_s12 = int_to_ptr.vmem [resolvable:$true] %s31_s12 }
   0x8   :  { %25 = vst [vmem:[#allocation5] sm:$0xff] %v24_v1 }
   0x9   :  { %36 = dma.vmem_to_hbm [thread:$0]  %s32_s12, 128, %s34_s15, [#allocation4]  }
   0xa   :  { %95 = dma.done.wait [#allocation4], 128  }
   0xb   :  { %96 = vsyncadd [#allocation4], 4294967168 }
   0xc   :  { %41 = vsyncpa [#allocation3], 1 }
   0xd   :  { %42 = vsyncpa [#allocation4], 1 }

// kernel: tpu_custom_call.1
= control target key start
LH: loop header
LB: loop body
LE: loop exit
PB: predicated region body
PF: predicated region fallthrough
CT: control target
= control target key end

     0   :  { %s1612_s0 = inlined_call_operand.hbm [shape: f32[2,32,32], index: 0, kind: input, shape index: {}]   ;;  %s1613_s1 = inlined_call_operand.hbm [shape: f32[1,32], index: 1, kind: input, shape index: {}]   ;;  %s1614_s2 = inlined_call_operand.vmem [shape: f32[1,32], index: 2, kind: input, shape index: {}]   ;;  %s1615_s3 = inlined_call_operand.hbm [shape: f32[32,32], index: 3, kind: input, shape index: {}]   ;;  %s1616_s4 = inlined_call_operand.hbm [shape: f32[32,32], index: 4, kind: input, shape index: {}]   ;;  %s1617_s5 = inlined_call_operand.hbm [shape: f32[32,32], index: 5, kind: input, shape index: {}]   ;;  %s1618_s6 = inlined_call_operand.hbm [shape: f32[2,32,32], index: 6, kind: output, shape index: {0}]   ;;  %s1619_s7 = inlined_call_operand.hbm [shape: f32[2,32,32], index: 7, kind: output, shape index: {1}]   ;;  %s1620_s8 = inlined_call_operand.hbm [shape: f32[2,32,32], index: 8, kind: output, shape index: {2}]  }
   0x1   :  { %1632 = sst [smem:[#allocation26_spill]] %s1613_s1 }
   0x2   :  { %1633 = sst [smem:[#allocation27_spill]] %s1615_s3 }
   0x3   :  { %1634 = sst [smem:[#allocation28_spill]] %s1616_s4 }
   0x4   :  { %1635 = sst [smem:[#allocation29_spill]] %s1617_s5 }
   0x5   :  { %1636 = sst [smem:[#allocation30_spill]] %s1620_s8 }
   0x6   :  { %14 = vsyncpa [#allocation3], 0 }
   0x7   :  { %16 = vsyncpa [#allocation3 + $0x1], 0 }
   0x8   :  { %17 = vsyncpa [#allocation6], 0 }
   0x9   :  { %18 = vsyncpa [#allocation9], 0 }
   0xa   :  { %19 = vsyncpa [#allocation4], 0 }
   0xb   :  { %21 = vsyncpa [#allocation4 + $0x1], 0 }
   0xc   :  { %22 = vsyncpa [#allocation13], 0 }
   0xd   :  { %24 = vsyncpa [#allocation13 + $0x1], 0  ;;  %s1338_s27 = smov 0   ;;  %s1340_s28 = smov 0  }
   0xe   :  { %s1342_s29 = smov 0   ;;  %s1344_s30 = smov 0  }
   0xf   :  { %s1346_s9 = smov 0   ;;  %s1348_s10 = smov 0  }
  0x10   :  { %s1350_s11 = smov 0   ;;  %s1352_s12 = smov 0  }
  0x11 LB: > { %1637 = sst [smem:[#allocation20_spill]] %s1256_s27  ;;  %s1379_s13 = sadd.s32 4294967295, %s1284_s12   ;;  %s1284_s12 = sphi %s1352_s12, %s30_s12   ;;  %s1280_s11 = sphi %s1350_s11, %s1672_s11   ;;  %s1276_s10 = sphi %s1348_s10, %s1671_s10   ;;  %s1272_s9 = sphi %s1346_s9, %s1670_s9   ;;  %s1268_s30 = sphi %s1344_s30, %s1669_s30   ;;  %s1264_s29 = sphi %s1342_s29, %s1668_s29   ;;  %s1260_s28 = sphi %s1340_s28, %s1667_s28   ;;  %s1256_s27 = sphi %s1338_s27, %s1666_s27  }
  0x12   : > { %p798_p0 = scmp.ge.s32.totalorder %s1284_s12, 1  ;;  %p65_p1 = scmp.eq.s32.totalorder %s1379_s13, 0 }
  0x13   : > { %p264_p2 = scmp.lt.s32.totalorder %s1284_s12, 9  ;;  %s1638_s1 = sld [smem:[#allocation26_spill]] }
  0x14   : > { %s1286_s18 = smov [#allocation5]   ;;  %s1641_s4 = sld [smem:[#allocation28_spill]] }
  0x15   : > { %p1387_p3 = pnand %p798_p0, %p264_p2  ;;  %s278_s19 = sshll.u32 %s1286_s18, 4  ;;  %s279_s19 = int_to_ptr.vmem [resolvable:$true] %s278_s19 }
  0x16   : > { %s1287_s24 = smov [#allocation8]   ;;  %s1642_s3 = sld [smem:[#allocation27_spill]] }
  0x17   : > { %p854_p4 = pneg %p1387_p3  ;;  %s306_s25 = sshll.u32 %s1287_s24, 4  ;;  %s307_s25 = int_to_ptr.vmem [resolvable:$true] %s306_s25 }
  0x18   : > { %s1288_s18 = smov 128   ;;  %s1289_s21 = smov 8  }
  0x19   : > { %s276_s16 = sshll.u32 %s1638_s1, 4  ;;  %p1395_p5 = pnand %p854_p4, %p65_p1  ;;  %s277_s16 = int_to_ptr.hbm [resolvable:$true] %s276_s16 }
  0x1a   : > { %s304_s23 = sshll.u32 %s1641_s4, 4  ;;  %s1643_s5 = sld [smem:[#allocation29_spill]]  ;;  %s305_s23 = int_to_ptr.hbm [resolvable:$true] %s304_s23 }
  0x1b   : > { %857 = dma.hbm_to_vmem [thread:$0]  (!%p1395_p5), %s277_s16, 16, %s279_s19, [#allocation6]  }
  0x1c   : > { %s290_s15 = sshll.u32 %s1642_s3, 4  ;;  %s1290_s19 = smov [#allocation7]   ;;  %s291_s15 = int_to_ptr.hbm [resolvable:$true] %s290_s15 }
  0x1d   : > { %863 = dma.hbm_to_vmem [thread:$0]  (!%p1395_p5), %s305_s23, 512, %s307_s25, [#allocation9], %s1288_s18, %s1288_s18, %s1289_s21  }
  0x1e   : > { %s292_s24 = sshll.u32 %s1290_s19, 4  ;;  %s1291_s26 = smov [#allocation10]   ;;  %s293_s24 = int_to_ptr.vmem [resolvable:$true] %s292_s24 }
  0x1f   : > { %860 = dma.hbm_to_vmem [thread:$0]  (!%p1395_p5), %s291_s15, 512, %s293_s24, [#allocation6], %s1288_s18, %s1288_s18, %s1289_s21  }
  0x20   : > { %s318_s16 = sshll.u32 %s1643_s5, 4  ;;  %s320_s14 = sshll.u32 %s1291_s26, 4  ;;  %s319_s16 = int_to_ptr.hbm [resolvable:$true] %s318_s16  ;;  %s321_s14 = int_to_ptr.vmem [resolvable:$true] %s320_s14 }
  0x21   : > { %866 = dma.hbm_to_vmem [thread:$0]  (!%p1395_p5), %s319_s16, 512, %s321_s14, [#allocation9], %s1288_s18, %s1288_s18, %s1289_s21  }
  0x22   : > { %s1626_s1 = sadd.s32 4294967294, %s1284_s12   ;;  %s39_s23 = sadd.s32 1, %s1276_s10 }
  0x23   : > { %p40_p6 = scmp.ge.s32.totalorder %s39_s23, 4  ;;  %s42_s25 = sadd.s32 1, %s1280_s11 }
  0x24   : > { %s51_s22 = sadd.s32 1, %s1264_s29  ;;  %p58_p7 = scmp.ne.s32.totalorder %s1264_s29, %s1260_s28 }
  0x25   : > { %s1674_s23 = smov (%p40_p6, %s39_s23), 0  ;;  %s1676_s25 = smov (!%p40_p6, %s42_s25), %s1280_s11 }
  0x26   : > { %1644 = sst [smem:[#allocation21_spill]] %s1674_s23  ;;  %s47_s15 = ssub.s32 %s1276_s10, %s1674_s23 }
  0x27   : > { %p59_p8 = scmp.eq.s32.totalorder %s1284_s12, 0  ;;  %p44_p9 = scmp.ge.s32.totalorder %s1676_s25, 2 }
  0x28   : > { %p64_p10 = scmp.ne.s32.totalorder %s1260_s28, %s1256_s27  ;;  %p195_p12 = scmp.eq.s32.totalorder %s1379_s13, 7 }
  0x29   : > { %p1430_p11 = por %p59_p8, %p58_p7  ;;  %s1678_s25 = smov (%p44_p9, %s1676_s25), 0 }
  0x2a   : > { %1646 = sst [smem:[#allocation22_spill]] %s1678_s25  ;;  %p1439_p13 = por %p65_p1, %p64_p10 }
  0x2b   : > { %p1443_p0 = por %p195_p12, %p58_p7  ;;  %s46_s16 = ssub.s32 %s1280_s11, %s1678_s25 }
  0x2c   : > { %p201_p2 = scmp.eq.s32.totalorder %s1626_s1, 7  ;;  %s48_s19 = sor.u32 %s47_s15, %s46_s16 }
  0x2d   : > { %s1648_s21 = scalar_select %p1443_p0, 1, 0 }
  0x2e   : > { %p885_p4 = scmp.lt.s32.totalorder %s1284_s12, 8  ;;  %p49_p5 = scmp.eq.s32.totalorder %s48_s19, 0 }
  0x2f   : > { %1649 = sst [smem:[#allocation23_spill]] %s1648_s21  ;;  %p1452_p6 = por %p201_p2, %p64_p10 }
  0x30   : > { %s334_s26 = sand.u32 1, %s1264_s29   ;;  %s805_s14 = sshll.u32 %s1280_s11, 2 }
  0x31   : > { %s1459_s3 = scalar_select %p49_p5, %s1264_s29, %s51_s22  }
  0x32   : > { %s804_s4 = sshll.u32 %s334_s26, 3  ;;  %s342_s5 = sadd.s32 %s1276_s10, %s805_s14 }
  0x33   : > { %s806_s23 = sshll.u32 %s342_s5, 3  ;;  %s338_s27 = scalar_lea.vmem [#allocation2], %s804_s4 }
  0x34   : > { %s348_s25 = sshll.u32 %s338_s27, 4  ;;  %s344_s8 = scalar_lea.hbm %s1612_s0, %s806_s23  ;;  %s349_s25 = int_to_ptr.vmem [resolvable:$true] %s348_s25 }
  0x35   : > { %s346_s15 = sshll.u32 %s344_s8, 4  ;;  %p868_p7 = pnand %p885_p4, %p1430_p11  ;;  %s347_s15 = int_to_ptr.hbm [resolvable:$true] %s346_s15 }
  0x36   : > { %s335_s16 = scalar_lea.sflag [#allocation3], %s334_s26  ;;  %357 = sbr.rel (%p1387_p3) target bundleno = 502 (0x1f6), region = 44 }
  0x37   : > { %870 = dma.hbm_to_vmem [thread:$0]  (!%p868_p7), %s347_s15, 128, %s349_s25, %s335_s16  }
  0x3b   : > { %s1472_s5 = sand.u32 1, %s1260_s28  }
  0x3c   : > { %s1475_s4 = sshll.u32 %s1472_s5, 3  ;;  %s360_s27 = scalar_lea.sflag [#allocation3], %s1472_s5 }
  0x3d   : > { %s363_s8 = scalar_lea.vmem [#allocation2], %s1475_s4 }
  0x3e   : > { %1235 = dma.done.wait (%p1439_p13), %s360_s27, 128  }
  0x3f   : > { %1237 = vsyncadd (%p1439_p13), %s360_s27, 4294967168 }
  0x40   : > { %1239 = dma.done.wait (%p65_p1), [#allocation6], 528  }
  0x41   : > { %1241 = vsyncadd (%p65_p1), [#allocation6], 4294966768 }
  0x42   : > { %1243 = dma.done.wait (%p65_p1), [#allocation9], 1024  }
  0x43   : > { %1245 = vsyncadd (%p65_p1), [#allocation9], 4294966272  ;;  %vm430_vm0 = vcmask 261120   ;;  %v427_v0 = vld [vmem:[%s363_s8] sm:$0xff]  ;;  %v1292_v2 = vmov 32.0   ;;  %v468_v23 = vld [vmem:[#allocation7] sm:$0xff] }
  0x44   : > { %v431_v1 = vsel %vm430_vm0, %v427_v0, 0.0  ;;  %964 = vrcp.f32 %v1292_v2  ;;  %v471_v14 = vld [vmem:[#allocation7 + $0x18] sm:$0xff]  ;;  %v470_v17 = vld [vmem:[#allocation7 + $0x10] sm:$0xff]  ;;  %v469_v20 = vld [vmem:[#allocation7 + $0x8] sm:$0xff]  ;;  %s822_s23 = sshll.u32 %s1272_s9, 2  ;;  %s419_s16 = scalar_lea.vmem [#allocation12], %s1475_s4 }
  0x45   : > { %432 = vadd.xlane.f32.xlu0 %v431_v1  ;;  %v499_v15 = vld [vmem:[#allocation8 + $0x18] sm:$0xff]  ;;  %487 = vmatpush.msra.mxu0 %v471_v14  ;;  %v498_v18 = vld [vmem:[#allocation8 + $0x10] sm:$0xff]  ;;  %v497_v21 = vld [vmem:[#allocation8 + $0x8] sm:$0xff]  ;;  %s567_s25 = sadd.s32 %s1268_s30, %s822_s23  ;;  %s1509_s27 = sshll.u32 %s419_s16, 4 }
  0x46   : > { %v524_v16 = vld [vmem:[#allocation10 + $0x18] sm:$0xff]  ;;  %512 = vmatpush.msra.mxu1 %v499_v15  ;;  %v523_v19 = vld [vmem:[#allocation10 + $0x10] sm:$0xff]  ;;  %v522_v22 = vld [vmem:[#allocation10 + $0x8] sm:$0xff]  ;;  %s823_s22 = sshll.u32 %s567_s25, 3  ;;  %1651 = sst [smem:[#allocation24_spill]] %s1509_s27 }
  0x47   : > { %537 = vmatpush.msra.mxu2 %v524_v16  ;;  %488 = vmatpush.msra.mxu0 %v470_v17  ;;  %v496_v24 = vld [vmem:[#allocation8] sm:$0xff]  ;;  %v962_v35 = vld [vmem:[#allocation5] ss:$0 sm:$0xff]  ;;  %v963_v38 = vld [vmem:[%s1614_s2] ss:$0 sm:$0xff]  ;;  %s569_s21 = scalar_lea.hbm %s1618_s6, %s823_s22  ;;  %s585_s15 = scalar_lea.hbm %s1619_s7, %s823_s22 }
  0x48   : > { %513 = vmatpush.msra.mxu1 %v498_v18  ;;  %v521_v25 = vld [vmem:[#allocation10] sm:$0xff]  ;;  %s412_s8 = scalar_lea.vmem [#allocation11], %s1475_s4  ;;  %s1514_s30 = sshll.u32 %s569_s21, 4  ;;  %s574_s30 = int_to_ptr.hbm [resolvable:$true] %s1514_s30 }
  0x49   : > { %538 = vmatpush.msra.mxu2 %v523_v19  ;;  %489 = vmatpush.msra.mxu0 %v469_v20  ;;  %s1512_s9 = sshll.u32 %s412_s8, 4  ;;  %s1516_s17 = sshll.u32 %s585_s15, 4  ;;  %s572_s9 = int_to_ptr.vmem [resolvable:$true] %s1512_s9 }
  0x4a   : > { %v965_v3 = vpop.eup %964  ;;  %514 = vmatpush.msra.mxu1 %v497_v21  ;;  %1652 = sst [smem:[#allocation25_spill]] %s1516_s17  ;;  %s1631_s26 = scalar_lea.vmem [#allocation14], %s1475_s4 }
  0x4b   : > { %v435_v4 = vmul.f32 32.0, %v965_v3  ;;  %vm439_vm1 = vweird.f32 %v965_v3  ;;  %539 = vmatpush.msra.mxu2 %v522_v22  ;;  %490 = vmatpush.msra.mxu0 %v468_v23  ;;  %s1653_s25 = sld [smem:[#allocation30_spill]]  ;;  %s1529_s21 = sshll.u32 %s1631_s26, 4  ;;  %s604_s21 = int_to_ptr.vmem [resolvable:$true] %s1529_s21 }
  0x4c   : > { %515 = vmatpush.msra.mxu1 %v496_v24  ;;  %s547_s15 = scalar_lea.sflag [#allocation4], %s1472_s5  ;;  %s1132_s1 = sshra.s32 %s574_s30, 4  ;;  %s1133_s1 = int_to_ptr.hbm [resolvable:$true] %s1132_s1 }
  0x4d   : > { %v436_v5 = vsub.f32 1.0, %v435_v4  ;;  %540 = vmatpush.msra.mxu2 %v521_v25  ;;  %p1139_p9 = scmp.lt.s32.totalorder %s1133_s1, %s1618_s6 }
  0x4f   : > { %v437_v6 = vmul.f32 %v965_v3, %v436_v5 }
  0x51   : > { %v438_v7 = vadd.f32 %v965_v3, %v437_v6  ;;  %s601_s20 = scalar_lea.hbm %s1653_s25, %s823_s22  ;;  %s1134_s22 = scalar_lea.hbm %s1133_s1, 8 }
  0x52   : > { %s1531_s14 = sshll.u32 %s601_s20, 4  ;;  %p1135_p1 = scmp.ne.s32.totalorder %s1133_s1, %s1134_s22  ;;  %s606_s14 = int_to_ptr.hbm [resolvable:$true] %s1531_s14 }
  0x53   : > { %v440_v8 = vsel %vm439_vm1, %v965_v3, %v438_v7 }
  0x54   : > { %p1136_p3 = pnand %p1135_p1, %p1443_p0 }
  0x56   : > { %p1137_p8 = pneg %p1136_p3 }
  0xb8   : > { %v433_v9 = vpop.xlane.xlu0 %432 }
  0xb9   : > { %v441_v10 = vmul.f32 %v440_v8, %v433_v9 }
  0xbb   : > { %v442_v11 = vsub.f32 %v427_v0, %v441_v10 }
  0xbd   : > { %v443_v12 = vmul.f32 %v442_v11, %v442_v11 }
  0xbf   : > { %v444_v13 = vsel %vm430_vm0, %v443_v12, 0.0 }
  0xc0   : > { %445 = vadd.xlane.f32.xlu0 %v444_v13 }
 0x133   : > { %v446_v26 = vpop.xlane.xlu0 %445 }
 0x134   : > { %v447_v27 = vmul.f32 %v446_v26, %v440_v8 }
 0x136   : > { %v448_v28 = vadd.f32 1e-05, %v447_v27 }
 0x138   : > { %966 = vrsqrt.f32 %v448_v28  ;;  %vm455_vm3 = vweird.f32 %v448_v28 }
 0x13e   : > { %v967_v29 = vpop.eup %966 }
 0x13f   : > { %v450_v30 = vmul.f32 %v967_v29, %v448_v28  ;;  %vm456_vm2 = vweird.f32 %v967_v29 }
 0x140   : > { %vm457_vm4 = vmor %vm455_vm3, %vm456_vm2 }
 0x141   : > { %v451_v31 = vmul.f32 %v967_v29, %v450_v30 }
 0x143   : > { %v452_v32 = vmul.f32 0.5, %v451_v31 }
 0x145   : > { %v453_v33 = vsub.f32 1.5, %v452_v32 }
 0x147   : > { %v454_v34 = vmul.f32 %v967_v29, %v453_v33 }
 0x149   : > { %v458_v36 = vsel %vm457_vm4, %v967_v29, %v454_v34 }
 0x14a   : > { %v459_v37 = vmul.f32 %v458_v36, %v442_v11 }
 0x14c   : > { %v463_v39 = vmul.f32 %v962_v35, %v459_v37 }
 0x14e   : > { %v467_v40 = vadd.f32 %v963_v38, %v463_v39 }
 0x150   : > { %816 = vmatmul.msk.f32.vlgmr.msra.gmra.mxu0 %vm430_vm0, %v467_v40  ;;  %817 = vmatmul.msk.f32.vlgmr.msra.gmra.mxu1 %vm430_vm0, %v467_v40 }
 0x151   : > { %818 = vmatmul.msk.f32.vlgmr.msra.gmra.mxu2 %vm430_vm0, %v467_v40 }
 0x1cd   : > { %v492_v41 = vpop.f32.mrf.mxu0  ;;  %v517_v42 = vpop.f32.mrf.mxu1 }
 0x1ce   : > { %495 = vst.msk [vmem:[%s412_s8] sm:$0xff] %vm430_vm0, %v492_v41  ;;  %s1138_s8 = scalar_lea.hbm %s1618_s6, 64 }
 0x1cf   : > { %520 = vst.msk [vmem:[%s419_s16] sm:$0xff] %vm430_vm0, %v517_v42  ;;  %p1140_p10 = scmp.lt.s32.totalorder %s1138_s8, %s1134_s22 }
 0x1d1   : > { %p1141_p11 = por %p1140_p10, %p1139_p9 }
 0x1d3   : > { %p1142_p12 = pnand %p1141_p11, %p1137_p8 }
 0x1d5   : > { %1145 = shalt.err (!%p1142_p12)
}
 0x1d6   : > { %s1655_s5 = sld [smem:[#allocation25_spill]]  ;;  %s1656_s16 = sand.u32 1, %s1379_s13  }
 0x1d7   : > { %848 = dma.vmem_to_hbm [thread:$0]  (%p1443_p0), %s572_s9, 128, %s574_s30, %s547_s15  }
 0x1d8   : > { %s1547_s20 = scalar_lea.sflag [#allocation13], %s1656_s16  ;;  %s1166_s1 = scalar_lea.hbm %s1619_s7, 64 }
 0x1dc   : > { %s1657_s26 = int_to_ptr.hbm [resolvable:$true] %s1655_s5 }
 0x1dd   : > { %s1160_s27 = sshra.s32 %s1657_s26, 4  ;;  %s1161_s27 = int_to_ptr.hbm [resolvable:$true] %s1160_s27 }
 0x1de   : > { %s1162_s23 = scalar_lea.hbm %s1161_s27, 8  ;;  %p1167_p5 = scmp.lt.s32.totalorder %s1161_s27, %s1619_s7 }
 0x1df   : > { %p1163_p13 = scmp.ne.s32.totalorder %s1161_s27, %s1162_s23  ;;  %p1168_p7 = scmp.lt.s32.totalorder %s1166_s1, %s1162_s23 }
 0x1e1   : > { %p1164_p2 = pnand %p1163_p13, %p1443_p0  ;;  %p1169_p1 = por %p1168_p7, %p1167_p5 }
 0x1e3   : > { %p1165_p4 = pneg %p1164_p2 }
 0x1e5   : > { %p1170_p3 = pnand %p1169_p1, %p1165_p4 }
 0x1e7   : > { %1173 = shalt.err (!%p1170_p3)
}
 0x1e8   : > { %s1658_s13 = smov %s1657_s26  ;;  %s1659_s9 = sld [smem:[#allocation24_spill]]  ;;  %v542_v43 = vpop.f32.mrf.mxu2 }
 0x1e9   : > { %s1661_s26 = scalar_lea.vmem [#allocation14], %s1475_s4  ;;  %s1188_s15 = sshra.s32 %s606_s14, 4  ;;  %s1189_s15 = int_to_ptr.hbm [resolvable:$true] %s1188_s15 }
 0x1ea   : > { %545 = vst.msk [vmem:[%s1661_s26] sm:$0xff] %vm430_vm0, %v542_v43  ;;  %s1190_s16 = scalar_lea.hbm %s1189_s15, 8  ;;  %s1194_s23 = scalar_lea.hbm %s1653_s25, 64 }
 0x1eb   : > { %p1191_p8 = scmp.ne.s32.totalorder %s1189_s15, %s1190_s16  ;;  %p1195_p11 = scmp.lt.s32.totalorder %s1189_s15, %s1653_s25 }
 0x1ec   : > { %p1196_p12 = scmp.lt.s32.totalorder %s1194_s23, %s1190_s16 }
 0x1ed   : > { %p1192_p9 = pnand %p1191_p8, %p1443_p0 }
 0x1ee   : > { %s1660_s30 = int_to_ptr.vmem [resolvable:$true] %s1659_s9  ;;  %p1197_p13 = por %p1196_p12, %p1195_p11 }
 0x1ef   : > { %849 = dma.vmem_to_hbm [thread:$0]  (%p1443_p0), %s1660_s30, 128, %s1658_s13, %s1547_s20  }
 0x1f0   : > { %p1193_p10 = pneg %p1192_p9 }
 0x1f2   : > { %p1198_p2 = pnand %p1197_p13, %p1193_p10 }
 0x1f4   : > { %1201 = shalt.err (!%p1198_p2)
}
 0x1f5   : > { %850 = dma.vmem_to_hbm [thread:$0]  (%p1443_p0), %s604_s21, 128, %s606_s14, %s1547_s20  }
 0x1f6 PF: > { %s1662_s4 = sld [smem:[#allocation20_spill]]  ;;  %p890_p4 = scmp.ge.s32.totalorder %s1284_s12, 2 }
 0x1f8   : > { %p872_p5 = pnand %p890_p4, %p1452_p6 }
 0x1fa   : > { %p873_p7 = pneg %p872_p5 }
 0x1fc   : > { %s617_s1 = sand.u32 1, %s1662_s4  }
 0x1fd   : > { %s618_s22 = scalar_lea.sflag [#allocation4], %s617_s1 }
 0x1fe   : > { %1247 = dma.done.wait (%p873_p7), %s618_s22, 128  }
 0x1ff   : > { %1249 = vsyncadd (%p873_p7), %s618_s22, 4294967168  ;;  %s1663_s8 = sadd.s32 4294967294, %s1284_s12  }
 0x200   : > { %s627_s13 = sand.u32 1, %s1663_s8  }
 0x201   : > { %s628_s9 = scalar_lea.sflag [#allocation13], %s627_s13 }
 0x202   : > { %1251 = dma.done.wait (%p873_p7), %s628_s9, 256  }
 0x203   : > { %1253 = vsyncadd (%p873_p7), %s628_s9, 4294967040  ;;  %s30_s12 = sadd.s32 1, %s1284_s12   ;;  %s1664_s24 = sld [smem:[#allocation21_spill]] }
 0x204   : > { %p27_p0 = scmp.ge.s32.totalorder %s30_s12, 10   ;;  %s1665_s18 = sld [smem:[#allocation22_spill]] }
 0x205   : > { %s1666_s27 = smov %s1260_s28  ;;  %s1667_s28 = smov %s1264_s29 }
 0x206   : > { %s1668_s29 = smov %s1459_s3  ;;  %s1669_s30 = smov %s1276_s10 }
 0x207   : > { %s1670_s9 = smov %s1280_s11  ;;  %29 = sbr.rel (!%p27_p0) target bundleno = 17 (0x11), region = 137 }
 0x209   : > { %s1671_s10 = smov %s1664_s24 }
 0x20a   : > { %s1672_s11 = smov %s1665_s18 }
 0x20c   :  { %644 = vsyncpa [#allocation3], 1 }
 0x20d   :  { %646 = vsyncpa [#allocation3 + $0x1], 1 }
 0x20e   :  { %647 = vsyncpa [#allocation6], 1 }
 0x20f   :  { %648 = vsyncpa [#allocation9], 1 }
 0x210   :  { %649 = vsyncpa [#allocation4], 1 }
 0x211   :  { %651 = vsyncpa [#allocation4 + $0x1], 1 }
 0x212   :  { %652 = vsyncpa [#allocation13], 1 }
 0x213   :  { %654 = vsyncpa [#allocation13 + $0x1], 1 }

</bundles_post_ra>
